<compile_context>
chip_gen: v6e
topology: v6e:2x2x1
jax: 0.10.0
libtpu: 0.0.40
codegen_flags: <defaults>
</compile_context>

<pallas_src>
import functools
import math

import jax
import jax.numpy as jnp
from jax.experimental import pallas as pl
from jax.experimental.pallas import tpu as pltpu

BN_EPS = 1e-5


def _round_up(x, m):
    return ((x + m - 1) // m) * m


# ---------------------------------------------------------------------------
# Pallas kernels
# ---------------------------------------------------------------------------

def _mm_kernel(x_ref, w_ref, b_ref, o_ref, *, relu):
    # bf16 x bf16 on the MXU, f32 accumulate, f32 epilogue, cast on store.
    acc = jnp.dot(x_ref[...], w_ref[...], preferred_element_type=jnp.float32)
    acc = acc + b_ref[...]
    if relu:
        acc = jnp.maximum(acc, 0.0)
    o_ref[...] = acc.astype(o_ref.dtype)


def _conv_kernel(*refs, taps, cin, nb, oh, ow, m, relu, has_residual):
    """Fused conv: in-VMEM patch construction + matmul + BN-bias [+res] [+ReLU].

    x_ref:     (nb, Hi, Wi, cin) spatially padded activations (stride already 1).
    w_ref:     (K, TN) BN-folded weight tile, K = len(taps)*cin.
    b_ref:     (1, TN) f32 BN bias.
    r_ref:     optional (M_pad, TN) residual.
    o_ref:     (M_pad, TN) output tile.
    patch_ref: (M_pad, K) bf16 VMEM scratch -- the im2col matrix, never in HBM.
    """
    if has_residual:
        x_ref, w_ref, b_ref, r_ref, o_ref, patch_ref = refs
    else:
        x_ref, w_ref, b_ref, o_ref, patch_ref = refs
        r_ref = None
    m_pad, k_dim = patch_ref.shape

    if m_pad > m:  # keep the (discarded) tail rows finite
        patch_ref[m:m_pad, :] = jnp.zeros((m_pad - m, k_dim), patch_ref.dtype)

    # Static, fully-unrolled patch build: one (ow, cin) row-group per (tap, n, oh).
    # All offsets are static; column slots are 128-aligned (cin is a multiple of
    # 128 for every conv routed through this kernel).
    for t, (ti, tj) in enumerate(taps):
        col0 = t * cin
        for n in range(nb):
            for r in range(oh):
                row0 = (n * oh + r) * ow
                patch_ref[row0:row0 + ow, col0:col0 + cin] = (
                    x_ref[n, ti + r, tj:tj + ow, :])

    acc = jnp.dot(patch_ref[...], w_ref[...], preferred_element_type=jnp.float32)
    acc = acc + b_ref[...]
    if r_ref is not None:
        acc = acc + r_ref[...].astype(jnp.float32)
    if relu:
        acc = jnp.maximum(acc, 0.0)
    o_ref[...] = acc.astype(o_ref.dtype)


# ---------------------------------------------------------------------------
# Pallas wrappers
# ---------------------------------------------------------------------------

def matmul_bias(x, w, bias, *, relu, out_dtype=jnp.bfloat16):
    """out = relu_opt(x @ w + bias); returns (M_pad, N) (caller slices rows)."""
    m, k = x.shape
    k2, n = w.shape
    assert k == k2, (k, k2)
    m_pad = _round_up(m, 8)
    if m_pad != m:
        x = jnp.pad(x, ((0, m_pad - m), (0, 0)))
    x = x.astype(jnp.bfloat16)

    tm = 128 if m_pad % 128 == 0 else m_pad
    tn = 128 if (n % 128 == 0) else n
    grid = (m_pad // tm, n // tn)

    cost = pl.CostEstimate(
        flops=2 * m_pad * k * n, transcendentals=0,
        bytes_accessed=m_pad * k * 2 + k * n * 2 + m_pad * n * 2 + n * 4)

    out = pl.pallas_call(
        functools.partial(_mm_kernel, relu=relu),
        out_shape=jax.ShapeDtypeStruct((m_pad, n), out_dtype),
        grid=grid,
        in_specs=[
            pl.BlockSpec((tm, k), lambda i, j: (i, 0)),
            pl.BlockSpec((k, tn), lambda i, j: (0, j)),
            pl.BlockSpec((1, tn), lambda i, j: (0, j)),
        ],
        out_specs=pl.BlockSpec((tm, tn), lambda i, j: (i, j)),
        compiler_params=pltpu.CompilerParams(
            dimension_semantics=("parallel", "parallel")),
        cost_estimate=cost,
    )(x, w, bias)
    return out


def conv_spatial(x, cp, *, relu, residual=None, out_dtype=jnp.bfloat16):
    """Stride-1 conv (spatial padding already applied) fused with BN/res/ReLU.

    x: (N, Hi, Wi, Cin) bf16;  output: (M_pad, Cout) bf16 with M = N*OH*OW.
    """
    nb, hi, wi, cin = x.shape
    kh, kw = cp["kh"], cp["kw"]
    assert cin == cp["cin"], (cin, cp["cin"])
    oh, ow = hi - kh + 1, wi - kw + 1
    m = nb * oh * ow
    m_pad = _round_up(m, 8)
    k_dim, cout = cp["w"].shape
    taps = tuple((i, j) for i in range(kh) for j in range(kw))
    assert k_dim == len(taps) * cin

    # N-parallel grid (keeps v7x's second TensorCore busy for the wide layers).
    tn = 128 if (cout > 128 and cout % 128 == 0) else cout
    n_tiles = cout // tn

    in_specs = [
        pl.BlockSpec((nb, hi, wi, cin), lambda j: (0, 0, 0, 0)),
        pl.BlockSpec((k_dim, tn), lambda j: (0, j)),
        pl.BlockSpec((1, tn), lambda j: (0, j)),
    ]
    args = [x, cp["w"], cp["b"]]
    if residual is not None:
        if residual.shape[0] < m_pad:
            residual = jnp.pad(residual, ((0, m_pad - residual.shape[0]), (0, 0)))
        in_specs.append(pl.BlockSpec((m_pad, tn), lambda j: (0, j)))
        args.append(residual)

    bytes_acc = (x.size * 2 + cp["w"].size * 2 + cp["b"].size * 4
                 + m_pad * cout * 2
                 + (residual.size * 2 if residual is not None else 0))
    cost = pl.CostEstimate(flops=2 * m_pad * k_dim * cout, transcendentals=0,
                           bytes_accessed=int(bytes_acc))

    kernel = functools.partial(
        _conv_kernel, taps=taps, cin=cin, nb=nb, oh=oh, ow=ow, m=m,
        relu=relu, has_residual=residual is not None)

    out = pl.pallas_call(
        kernel,
        out_shape=jax.ShapeDtypeStruct((m_pad, cout), out_dtype),
        grid=(n_tiles,),
        in_specs=in_specs,
        out_specs=pl.BlockSpec((m_pad, tn), lambda j: (0, j)),
        scratch_shapes=[pltpu.VMEM((m_pad, k_dim), jnp.bfloat16)],
        compiler_params=pltpu.CompilerParams(dimension_semantics=("parallel",)),
        cost_estimate=cost,
    )(*args)
    return out


# ---------------------------------------------------------------------------
# Plain-JAX glue (cheap layout ops only)
# ---------------------------------------------------------------------------

def im2col(x, kh, kw, stride, pad, k_pad=None):
    # Only used for the 7x7/stride-2 stem (Cin=3, patch matrix is tiny).
    N, H, W, C = x.shape
    xp = jnp.pad(x, ((0, 0), (pad, pad), (pad, pad), (0, 0)))
    OH = (H + 2 * pad - kh) // stride + 1
    OW = (W + 2 * pad - kw) // stride + 1
    cols = []
    for i in range(kh):
        for j in range(kw):
            cols.append(xp[:, i:i + stride * OH:stride, j:j + stride * OW:stride, :])
    K = kh * kw * C
    if k_pad is not None and k_pad > K:
        cols.append(jnp.zeros((N, OH, OW, k_pad - K), x.dtype))
        K = k_pad
    patches = jnp.concatenate(cols, axis=-1)
    return patches.reshape(N * OH * OW, K), (N, OH, OW)


def space_to_depth2(xp):
    # (N, Hp, Wp, C) -> (N, Hp/2, Wp/2, 4C); channel group g = 2*row_phase + col_phase.
    N, Hp, Wp, C = xp.shape
    if Hp % 2 or Wp % 2:
        xp = jnp.pad(xp, ((0, 0), (0, Hp % 2), (0, Wp % 2), (0, 0)))
        Hp, Wp = xp.shape[1], xp.shape[2]
    x = xp.reshape(N, Hp // 2, 2, Wp // 2, 2, C)
    x = jnp.transpose(x, (0, 1, 3, 2, 4, 5))
    return x.reshape(N, Hp // 2, Wp // 2, 4 * C)


def maxpool_3x3_s2_p1(x):
    # TODO(synk): kept as lax.reduce_window (XLA); a Pallas kernel adds little here.
    init = jnp.array(-jnp.inf, dtype=x.dtype)
    return jax.lax.reduce_window(
        x, init, jax.lax.max,
        window_dimensions=(1, 3, 3, 1),
        window_strides=(1, 2, 2, 1),
        padding=((0, 0), (1, 1), (1, 1), (0, 0)),
    )


# ---------------------------------------------------------------------------
# Parameter init (PyTorch layout/init) and one-time preparation
# ---------------------------------------------------------------------------

def init_params(key, block_num=(1, 1, 1, 1), num_classes=10):
    keys = iter(jax.random.split(key, 64))

    def conv_w(cout, cin, k):
        fan_out = cout * k * k  # kaiming_normal_, mode='fan_out', relu
        std = math.sqrt(2.0 / fan_out)
        return std * jax.random.normal(next(keys), (cout, cin, k, k), jnp.float32)

    def bn(c):
        return dict(gamma=jnp.ones((c,), jnp.float32), beta=jnp.zeros((c,), jnp.float32),
                    mean=jnp.zeros((c,), jnp.float32), var=jnp.ones((c,), jnp.float32))

    params = dict(conv1=conv_w(64, 3, 7), bn1=bn(64))
    in_ch = 64
    layers = []
    for out_ch, n_blocks, stride in zip((64, 128, 256, 512), block_num, (1, 2, 2, 2)):
        blocks = []
        for bi in range(n_blocks):
            s = stride if bi == 0 else 1
            blk = dict(conv1=conv_w(out_ch, in_ch, 3), bn1=bn(out_ch),
                       conv2=conv_w(out_ch, out_ch, 3), bn2=bn(out_ch), stride=s)
            if s != 1 or in_ch != out_ch:  # BasicBlock.expansion == 1
                blk["down_conv"] = conv_w(out_ch, in_ch, 1)
                blk["down_bn"] = bn(out_ch)
            blocks.append(blk)
            in_ch = out_ch
        layers.append(blocks)
    params["layers"] = layers
    params["fc_w"] = 0.01 * jax.random.normal(next(keys), (num_classes, 512), jnp.float32)
    params["fc_b"] = jnp.zeros((num_classes,), jnp.float32)
    return params


def _fold_bn(bn):
    scale = bn["gamma"] / jnp.sqrt(bn["var"] + BN_EPS)
    bias = bn["beta"] - bn["mean"] * scale
    return scale, bias


def _prep_conv_mat(w, bn, cin_carried, cout_carried, k_pad=None):
    """Stride-1 conv -> (KH*KW*cin_carried, cout_carried) bf16 weight, BN folded."""
    Cout, Cin, KH, KW = w.shape
    scale, bias = _fold_bn(bn)
    wf = w * scale[:, None, None, None]
    wp = jnp.zeros((Cout, cin_carried, KH, KW), jnp.float32).at[:, :Cin, :, :].set(wf)
    wm = jnp.transpose(wp, (2, 3, 1, 0)).reshape(KH * KW * cin_carried, Cout)
    K = wm.shape[0]
    kp = k_pad if (k_pad is not None and k_pad > K) else K
    if kp > K:
        wm = jnp.pad(wm, ((0, kp - K), (0, 0)))
    if cout_carried > Cout:
        wm = jnp.pad(wm, ((0, 0), (0, cout_carried - Cout)))
        bias = jnp.pad(bias, (0, cout_carried - Cout))
    return dict(w=wm.astype(jnp.bfloat16), b=bias.astype(jnp.float32).reshape(1, -1),
                kh=KH, kw=KW, cin=cin_carried, cout=cout_carried, k=K, k_pad=kp)


def _prep_conv_s2d(w, bn, cin_carried, cout_carried):
    """3x3 stride-2 conv rewritten as a 2x2 stride-1 conv on space-to-depth input."""
    Cout, Cin, KH, KW = w.shape
    ke = (KH + 1) // 2
    scale, bias = _fold_bn(bn)
    wf = w * scale[:, None, None, None]
    wp = jnp.zeros((Cout, cin_carried, KH, KW), jnp.float32).at[:, :Cin, :, :].set(wf)
    rows = []
    for di in range(ke):
        for dj in range(ke):
            for a in range(2):
                for b in range(2):
                    i, j = 2 * di + a, 2 * dj + b
                    if i < KH and j < KW:
                        rows.append(jnp.transpose(wp[:, :, i, j], (1, 0)))
                    else:
                        rows.append(jnp.zeros((cin_carried, Cout), jnp.float32))
    wm = jnp.concatenate(rows, axis=0)  # (ke*ke*4*cin_carried, Cout)
    if cout_carried > Cout:
        wm = jnp.pad(wm, ((0, 0), (0, cout_carried - Cout)))
        bias = jnp.pad(bias, (0, cout_carried - Cout))
    return dict(w=wm.astype(jnp.bfloat16), b=bias.astype(jnp.float32).reshape(1, -1),
                kh=ke, kw=ke, cin=4 * cin_carried, cout=cout_carried)


def _prep_down(w, bn, cin_carried, cout_carried):
    """1x1 downsample conv -> plain (cin_carried, cout_carried) matmul weight."""
    Cout, Cin, _, _ = w.shape
    scale, bias = _fold_bn(bn)
    wm = jnp.zeros((cin_carried, Cout), jnp.float32).at[:Cin, :].set(
        jnp.transpose(w[:, :, 0, 0], (1, 0)) * scale[None, :])
    if cout_carried > Cout:
        wm = jnp.pad(wm, ((0, 0), (0, cout_carried - Cout)))
        bias = jnp.pad(bias, (0, cout_carried - Cout))
    return dict(w=wm.astype(jnp.bfloat16), b=bias.astype(jnp.float32).reshape(1, -1),
                cout=cout_carried)


def prepare_params(params, num_classes):
    """One-time conversion: BN-folded, channel-padded (>=128 lanes), bf16 weights."""
    def cpad(c):
        return _round_up(c, 128) if c < 128 else c

    fp = dict(conv1=_prep_conv_mat(params["conv1"], params["bn1"], cin_carried=3,
                                   cout_carried=cpad(64),
                                   k_pad=_round_up(7 * 7 * 3, 128)))
    carried = cpad(64)
    layers = []
    for blocks in params["layers"]:
        pblocks = []
        for blk in blocks:
            out_ch = blk["conv1"].shape[0]
            cout_c = cpad(out_ch)
            s = blk["stride"]
            if s == 2:
                c1 = _prep_conv_s2d(blk["conv1"], blk["bn1"], carried, cout_c)
            else:
                c1 = _prep_conv_mat(blk["conv1"], blk["bn1"], carried, cout_c)
            c2 = _prep_conv_mat(blk["conv2"], blk["bn2"], cout_c, cout_c)
            pb = dict(conv1=c1, conv2=c2, stride=s, down=None)
            if "down_conv" in blk:
                # TODO(synk): could fold the 1x1 downsample into conv1's matmul
                #             (center tap) to save one pallas_call per block.
                pb["down"] = _prep_down(blk["down_conv"], blk["down_bn"], carried, cout_c)
            pblocks.append(pb)
            carried = cout_c
        layers.append(pblocks)
    fp["layers"] = layers

    n_pad = _round_up(num_classes, 128)  # lane-dense FC output, sliced back
    fc_w = jnp.zeros((512, n_pad), jnp.float32).at[:, :num_classes].set(params["fc_w"].T)
    fc_b = jnp.zeros((1, n_pad), jnp.float32).at[0, :num_classes].set(params["fc_b"])
    fp["fc_w"] = fc_w.astype(jnp.bfloat16)
    fp["fc_b"] = fc_b
    fp["num_classes"] = num_classes
    return fp


# ---------------------------------------------------------------------------
# ResNet forward (BasicBlock, expansion = 1)
# ---------------------------------------------------------------------------

def basic_block(x, blk):
    nb, h, w, cin = x.shape
    s = blk["stride"]
    cout = blk["conv1"]["cout"]
    oh = (h - 1) // s + 1
    ow = (w - 1) // s + 1
    m = nb * oh * ow
    m_pad = _round_up(m, 8)

    # conv1 (3x3, stride s) + BN + ReLU.  Stride-2 handled via space-to-depth so
    # the Pallas kernel only ever sees stride-1 contiguous windows.
    xp = jnp.pad(x, ((0, 0), (1, 1), (1, 1), (0, 0)))
    xin = space_to_depth2(xp) if s == 2 else xp
    out1 = conv_spatial(xin, blk["conv1"], relu=True)           # (m_pad, cout)
    out1_4d = out1[:m].reshape(nb, oh, ow, cout)

    # identity path
    if blk["down"] is not None:
        xd = x[:, ::s, ::s, :].reshape(m, cin)
        identity = matmul_bias(xd, blk["down"]["w"], blk["down"]["b"], relu=False)
    else:
        identity = x.reshape(m, cin)
        if m_pad > m:
            identity = jnp.pad(identity, ((0, m_pad - m), (0, 0)))

    # conv2 (3x3 s1) + BN + residual-add + ReLU fused into one Pallas kernel.
    # TODO(synk): fusing conv1+downsample+conv2 of the launch-bound layer3/4
    #             blocks into a single pallas_call would cut 2 launches per block.
    xin2 = jnp.pad(out1_4d, ((0, 0), (1, 1), (1, 1), (0, 0)))
    out2 = conv_spatial(xin2, blk["conv2"], relu=True, residual=identity)
    return out2[:m].reshape(nb, oh, ow, cout)


def resnet_forward(fwd_params, x_nchw, include_top=True):
    x = jnp.transpose(x_nchw, (0, 2, 3, 1)).astype(jnp.bfloat16)  # NCHW -> NHWC bf16

    # Stem: 7x7/s2 conv via a small wrapper-side im2col (Cin=3 -> tiny patches).
    cp = fwd_params["conv1"]
    patches, (n, oh, ow) = im2col(x, 7, 7, 2, 3, k_pad=cp["k_pad"])
    out = matmul_bias(patches, cp["w"], cp["b"], relu=True)
    x = out[:n * oh * ow].reshape(n, oh, ow, cp["cout"])
    x = maxpool_3x3_s2_p1(x)

    for blocks in fwd_params["layers"]:
        for blk in blocks:
            x = basic_block(x, blk)

    if include_top:
        feat = jnp.mean(x.astype(jnp.float32), axis=(1, 2))  # AdaptiveAvgPool + flatten
        logits = matmul_bias(feat.astype(jnp.bfloat16), fwd_params["fc_w"],
                             fwd_params["fc_b"], relu=False, out_dtype=jnp.float32)
        return logits[:x.shape[0], :fwd_params["num_classes"]]
    return x


if __name__ == "__main__":
    key = jax.random.PRNGKey(0)
    k_param, k_input = jax.random.split(key)
    params = init_params(k_param, block_num=(1, 1, 1, 1), num_classes=10)
    fwd_params = prepare_params(params, num_classes=10)
    x = jax.random.normal(k_input, (2, 3, 32, 32), jnp.float32)  # NCHW like PyTorch
    out = resnet_forward(fwd_params, x)
    out = jax.block_until_ready(out)
    assert out.shape == (2, 10) and out.dtype == jnp.float32
    print("KERNEL_OK")
</pallas_src>

<mosaic_0001>
module attributes {stable_mosaic.version = 11 : i64} {
  func.func @_mm_kernel(%arg0: i32, %arg1: i32, %arg2: memref<128x256xbf16, #tpu.memory_space<vmem>>, %arg3: memref<256x128xbf16, #tpu.memory_space<vmem>>, %arg4: memref<1x128xf32, #tpu.memory_space<vmem>>, %arg5: memref<128x128xbf16, #tpu.memory_space<vmem>>) attributes {dimension_semantics = [#tpu.dimension_semantics<parallel>, #tpu.dimension_semantics<parallel>], iteration_bounds = array<i64: 4, 1>, scalar_prefetch = 0 : i64, scratch_operands = 0 : i64, tpu.core_type = #tpu.core_type<tc>, window_params = [{transform_indices = @transform_0, window_bounds = array<i64: 128, 256>}, {transform_indices = @transform_1, window_bounds = array<i64: 256, 128>}, {transform_indices = @transform_2, window_bounds = array<i64: 1, 128>}, {transform_indices = @transform_3, window_bounds = array<i64: 128, 128>}]} {
    %c0 = arith.constant 0 : index
    %c0_0 = arith.constant 0 : index
    %0 = vector.load %arg2[%c0, %c0_0] : memref<128x256xbf16, #tpu.memory_space<vmem>>, vector<128x256xbf16>
    %c0_1 = arith.constant 0 : index
    %c0_2 = arith.constant 0 : index
    %1 = vector.load %arg3[%c0_1, %c0_2] : memref<256x128xbf16, #tpu.memory_space<vmem>>, vector<256x128xbf16>
    %cst = arith.constant dense<0.000000e+00> : vector<128x128xf32>
    %2 = tpu.matmul %0, %1, %cst {dimension_numbers = #tpu.dot_dimension_numbers<[1], [0], [0], [1], [0, 0, 1, 1], [], []>} : vector<128x256xbf16>, vector<256x128xbf16>, vector<128x128xf32> -> vector<128x128xf32>
    %c0_3 = arith.constant 0 : index
    %c0_4 = arith.constant 0 : index
    %3 = vector.load %arg4[%c0_3, %c0_4] : memref<1x128xf32, #tpu.memory_space<vmem>>, vector<1x128xf32>
    %4 = vector.broadcast %3 : vector<1x128xf32> to vector<128x128xf32>
    %5 = arith.addf %2, %4 : vector<128x128xf32>
    %cst_5 = arith.constant 0.000000e+00 : f32
    %6 = vector.broadcast %cst_5 : f32 to vector<128x128xf32>
    %7 = arith.maximumf %5, %6 : vector<128x128xf32>
    %8 = arith.truncf %7 : vector<128x128xf32> to vector<128x128xbf16>
    %c0_6 = arith.constant 0 : index
    %c0_7 = arith.constant 0 : index
    %9 = vector.load %arg5[%c0_6, %c0_7] : memref<128x128xbf16, #tpu.memory_space<vmem>>, vector<128x128xbf16>
    tpu.vector_store %arg5[%c0_6, %c0_7], %8 {strides = array<i32>} : memref<128x128xbf16, #tpu.memory_space<vmem>>, vector<128x128xbf16>,
    return
  }
  func.func @transform_0(%arg0: i32, %arg1: i32) -> (i32, i32) {
    %c0_i32 = arith.constant 0 : i32
    %c0_i32_0 = arith.constant 0 : i32
    return %arg0, %c0_i32 : i32, i32
  }
  func.func @transform_1(%arg0: i32, %arg1: i32) -> (i32, i32) {
    %c0_i32 = arith.constant 0 : i32
    %c0_i32_0 = arith.constant 0 : i32
    return %c0_i32, %arg1 : i32, i32
  }
  func.func @transform_2(%arg0: i32, %arg1: i32) -> (i32, i32) {
    %c0_i32 = arith.constant 0 : i32
    %c0_i32_0 = arith.constant 0 : i32
    return %c0_i32, %arg1 : i32, i32
  }
  func.func @transform_3(%arg0: i32, %arg1: i32) -> (i32, i32) {
    %c0_i32 = arith.constant 0 : i32
    return %arg0, %arg1 : i32, i32
  }
}

</mosaic_0001>

<bundles_post_ra>
// kernel: tpu_custom_call.1
= control target key start
LH: loop header
LB: loop body
LE: loop exit
PB: predicated region body
PF: predicated region fallthrough
CT: control target
= control target key end

     0   :  { %8 = vsyncpa [#allocation3], 0  ;;  %s1521_s0 = inlined_call_operand.hbm [shape: bf16[512,256], index: 0, kind: input, shape index: {}]   ;;  %s1522_s1 = inlined_call_operand.hbm [shape: bf16[256,128], index: 1, kind: input, shape index: {}]   ;;  %s1523_s2 = inlined_call_operand.vmem [shape: f32[1,128], index: 2, kind: input, shape index: {}]   ;;  %s1524_s3 = inlined_call_operand.hbm [shape: bf16[512,128], index: 3, kind: output, shape index: {}]  }
   0x1   :  { %10 = vsyncpa [#allocation3 + $0x1], 0 }
   0x2   :  { %11 = vsyncpa [#allocation6], 0 }
   0x3   :  { %12 = vsyncpa [#allocation4], 0 }
   0x4   :  { %14 = vsyncpa [#allocation4 + $0x1], 0  ;;  %s1291_s12 = smov 0   ;;  %s1293_s13 = smov 0  }
   0x5   :  { %s1295_s14 = smov 0   ;;  %s1297_s15 = smov 0  }
   0x6   :  { %s1299_s16 = smov 0   ;;  %s1301_s17 = smov 0  }
   0x7 LB: > { %s789_s18 = sadd.s32 4294967295, %s1260_s17   ;;  %s790_s19 = sadd.s32 4294967294, %s1260_s17   ;;  %s1260_s17 = sphi %s1301_s17, %s20_s17   ;;  %s1256_s16 = sphi %s1299_s16, %s1541_s16   ;;  %s1252_s15 = sphi %s1297_s15, %s1540_s15   ;;  %s1248_s14 = sphi %s1295_s14, %s1539_s14   ;;  %s1244_s13 = sphi %s1293_s13, %s1538_s13   ;;  %s1240_s12 = sphi %s1291_s12, %s1537_s12  }
   0x8   : > { %p52_p0 = scmp.ne.s32.totalorder %s1244_s13, %s1240_s12  ;;  %p1325_p1 = scmp.eq.s32.totalorder %s789_s18, 0 }
   0x9   : > { %p1329_p2 = scmp.eq.s32.totalorder %s789_s18, 3  ;;  %p136_p3 = scmp.eq.s32.totalorder %s790_s19, 3 }
   0xa   : > { %p1335_p4 = por %p1325_p1, %p52_p0  ;;  %p791_p5 = scmp.ge.s32.totalorder %s1260_s17, 1 }
   0xb   : > { %p1340_p6 = por %p136_p3, %p52_p0  ;;  %p143_p7 = scmp.lt.s32.totalorder %s1260_s17, 5 }
   0xc   : > { %s1262_s25 = smov [#allocation5]   ;;  %s32_s28 = sadd.s32 1, %s1256_s16 }
   0xd   : > { %s1529_s23 = scalar_select %p1340_p6, 1, 0 }
   0xe   : > { %p1345_p8 = pnand %p791_p5, %p143_p7  ;;  %s157_s26 = sshll.u32 %s1262_s25, 4  ;;  %s158_s26 = int_to_ptr.vmem [resolvable:$true] %s157_s26 }
   0xf   : > { %s1133_s29 = scalar_lea.vmem %s158_s26, 2048  ;;  %p1141_p3 = scmp.lt.s32.totalorder %s158_s26, %s158_s26 }
  0x10   : > { %p1011_p9 = pneg %p1345_p8  ;;  %p1134_p12 = scmp.ne.s32.totalorder %s158_s26, %s1133_s29 }
  0x11   : > { %p1142_p5 = scmp.lt.s32.totalorder %s1133_s29, %s1133_s29 }
  0x12   : > { %p1353_p10 = pnand %p1011_p9, %p1325_p1 }
  0x13   : > { %p1143_p7 = por %p1142_p5, %p1141_p3 }
  0x14   : > { %p1124_p11 = pneg %p1353_p10 }
  0x16   : > { %p1136_p13 = pnand %p1134_p12, %p1124_p11 }
  0x18   : > { %p1137_p0 = pneg %p1136_p13 }
  0x1a   : > { %p1144_p6 = pnand %p1143_p7, %p1137_p0 }
  0x1c   : > { %1147 = shalt.err (!%p1144_p6)
}
  0x1d   : > { %s1263_s30 = smov 64   ;;  %s1264_s4 = smov 4  }
  0x1e   : > { %1014 = dma.hbm_to_vmem [thread:$0]  (!%p1353_p10), %s1522_s1, 2048, %s158_s26, [#allocation6], %s1263_s30, %s1263_s30, %s1264_s4  }
  0x1f   : > { %p34_p9 = scmp.ge.s32.totalorder %s32_s28, 4  ;;  %s39_s7 = sadd.s32 1, %s1248_s14 }
  0x20   : > { %p46_p6 = scmp.ne.s32.totalorder %s1248_s14, %s1244_s13  ;;  %p47_p11 = scmp.eq.s32.totalorder %s1260_s17, 0 }
  0x21   : > { %s1543_s28 = smov (%p34_p9, %s32_s28), 0  ;;  %p1024_p0 = scmp.lt.s32.totalorder %s1260_s17, 4 }
  0x22   : > { %p1371_p12 = por %p47_p11, %p46_p6  ;;  %p1377_p13 = por %p1329_p2, %p46_p6 }
  0x23   : > { %s36_s10 = ssub.s32 %s1256_s16, %s1543_s28  ;;  %s177_s11 = sand.u32 1, %s1248_s14  }
  0x24   : > { %s1533_s9 = scalar_select %p1377_p13, 1, 0 }
  0x25   : > { %p37_p10 = scmp.eq.s32.totalorder %s36_s10, 0  ;;  %s795_s18 = sshll.u32 %s177_s11, 7 }
  0x26   : > { %s858_s25 = sshll.u32 %s1256_s16, 11  ;;  %s181_s30 = scalar_lea.vmem [#allocation2], %s795_s18 }
  0x27   : > { %s1386_s19 = scalar_select %p37_p10, %s1248_s14, %s39_s7  }
  0x28   : > { %s188_s29 = scalar_lea.hbm %s1521_s0, %s858_s25  ;;  %s189_s4 = sshll.u32 %s181_s30, 4  ;;  %s190_s4 = int_to_ptr.vmem [resolvable:$true] %s189_s4 }
  0x29   : > { %p1394_p2 = pnand %p1024_p0, %p1371_p12  ;;  %s178_s5 = scalar_lea.sflag [#allocation3], %s177_s11 }
  0x2a   : > { %s1161_s6 = scalar_lea.vmem %s190_s4, 2048  ;;  %s1265_s7 = smov [#allocation2]  }
  0x2b   : > { %p1150_p3 = pneg %p1394_p2  ;;  %p1162_p5 = scmp.ne.s32.totalorder %s190_s4, %s1161_s6 }
  0x2c   : > { %s1166_s10 = sshll.u32 %s1265_s7, 4  ;;  %s1167_s10 = int_to_ptr.vmem [resolvable:$false] %s1166_s10 }
  0x2d   : > { %p1164_p7 = pnand %p1162_p5, %p1150_p3  ;;  %s1168_s25 = scalar_lea.vmem %s1167_s10, 4096 }
  0x2e   : > { %p1169_p6 = scmp.lt.s32.totalorder %s190_s4, %s1167_s10  ;;  %p1170_p11 = scmp.lt.s32.totalorder %s1168_s25, %s1161_s6 }
  0x2f   : > { %p1165_p9 = pneg %p1164_p7 }
  0x30   : > { %p1171_p10 = por %p1170_p11, %p1169_p6 }
  0x32   : > { %p1172_p13 = pnand %p1171_p10, %p1165_p9 }
  0x34   : > { %1175 = shalt.err (!%p1172_p13)
}
  0x35   : > { %s1266_s8 = smov 128   ;;  %s1267_s18 = smov 8  }
  0x36   : > { %1018 = dma.hbm_to_vmem [thread:$0]  (!%p1394_p2), %s188_s29, 2048, %s190_s4, %s178_s5, %s1266_s8, %s1266_s8, %s1267_s18  }
  0x37   : > { %201 = sbr.rel (%p1345_p8) target bundleno = 341 (0x155), region = 32  ;;  %s1405_s11 = sand.u32 (!%p1345_p8), 1, %s1244_s13  }
  0x38   : > { %s800_s26 = sshll.u32 (!%p1345_p8), %s1405_s11, 7  ;;  %s204_s27 = scalar_lea.sflag (!%p1345_p8), [#allocation3], %s1405_s11 }
  0x39   : > { %s1409_s30 = scalar_lea.vmem (!%p1345_p8), [#allocation2], %s800_s26 }
  0x3c   : > { %1227 = dma.done.wait (%p1335_p4), %s204_s27, 2048  }
  0x3d   : > { %1229 = vsyncadd (%p1335_p4), %s204_s27, 4294965248 }
  0x3e   : > { %1231 = dma.done.wait (%p1325_p1), [#allocation6], 2048  }
  0x3f   : > { %1233 = vsyncadd (%p1325_p1), [#allocation6], 4294965248  ;;  %v1082_v0 = vld [vmem:[#allocation5 + $0x78] sm:$0xff]   ;;  %v1084_v2 = vld [vmem:[#allocation5 + $0x70] sm:$0xff]   ;;  %s802_s24 = sshll.u32 %s1405_s11, 6  ;;  %s875_s4 = sshll.u32 %s1252_s15, 10 }
  0x40   : > { %v1083_v1 = vld [vmem:[#allocation5 + $0x38] sm:$0xff]   ;;  %923 = vmatprep.subr.bf16.mxu0 %v1082_v0  ;;  %987 = vmatprep.subr.bf16.mxu1 %v1082_v0  ;;  %v1085_v3 = vld [vmem:[#allocation5 + $0x30] sm:$0xff]   ;;  %v1086_v4 = vld [vmem:[#allocation5 + $0x68] sm:$0xff]   ;;  %s1447_s29 = scalar_lea.vmem [#allocation7], %s802_s24  ;;  %s1470_s7 = scalar_lea.hbm %s1524_s3, %s875_s4 }
  0x41   : > { %924 = vmatpush3.bf16.msra.mxu0 %v1083_v1  ;;  %995 = vmatpush3.bf16.msra.mxu1 %v1083_v1  ;;  %v1087_v5 = vld [vmem:[#allocation5 + $0x28] sm:$0xff]   ;;  %v1088_v6 = vld [vmem:[#allocation5 + $0x60] sm:$0xff]   ;;  %v1090_v8 = vld [vmem:[#allocation5 + $0x58] sm:$0xff]   ;;  %s682_s21 = sshll.u32 %s1447_s29, 4  ;;  %s668_s15 = scalar_lea.sflag [#allocation4], %s1405_s11  ;;  %s1472_s21 = int_to_ptr.vmem [resolvable:$true] %s682_s21 }
  0x42   : > { %925 = vmatprep.subr.bf16.mxu0 %v1084_v2  ;;  %988 = vmatprep.subr.bf16.mxu1 %v1084_v2  ;;  %v1089_v7 = vld [vmem:[#allocation5 + $0x20] sm:$0xff]   ;;  %v1091_v9 = vld [vmem:[#allocation5 + $0x18] sm:$0xff]   ;;  %v1092_v10 = vld [vmem:[#allocation5 + $0x50] sm:$0xff]   ;;  %s1176_s10 = scalar_lea.vmem %s1472_s21, 1024  ;;  %p1535_p4 = scmp.ne.s32.totalorder %s1533_s9, 0 }
  0x43   : > { %v1100_v11 = vld [vmem:[%s1409_s30 + $0x4] ss:$8 sps:$4 sm:$0xff]   ;;  %v1093_v13 = vld [vmem:[#allocation5 + $0x10] sm:$0xff]   ;;  %v1098_v18 = vld [vmem:[%s1409_s30] ss:$8 sps:$4 sm:$0xff]   ;;  %p1177_p1 = scmp.ne.s32.totalorder %s1472_s21, %s1176_s10  ;;  %s1268_s25 = smov [#allocation7]  }
  0x44   : > { %v1103_v12 = vld [vmem:[%s1409_s30 + $0x44] ss:$8 sps:$4 sm:$0xff]   ;;  %506 = vmatprep.mubr.bf16.mxu0 %v1100_v11  ;;  %v1101_v19 = vld [vmem:[%s1409_s30 + $0x40] ss:$8 sps:$4 sm:$0xff]   ;;  %v1104_v20 = vld [vmem:[%s1409_s30 + $0x14] ss:$8 sps:$4 sm:$0xff]  }
  0x45   : > { %926 = vmatpush3.bf16.msra.mxu0 %v1085_v3  ;;  %996 = vmatpush3.bf16.msra.mxu1 %v1085_v3  ;;  %v1094_v14 = vld [vmem:[#allocation5 + $0x48] sm:$0xff]   ;;  %v1096_v16 = vld [vmem:[#allocation5 + $0x40] sm:$0xff]   ;;  %v1106_v21 = vld [vmem:[%s1409_s30 + $0x54] ss:$8 sps:$4 sm:$0xff]   ;;  %p1178_p8 = pnand %p1177_p1, %p1535_p4  ;;  %s1180_s8 = sshll.u32 %s1268_s25, 4  ;;  %s1181_s8 = int_to_ptr.vmem [resolvable:$false] %s1180_s8 }
  0x46   : > { %927 = vmatprep.subr.bf16.mxu0 %v1086_v4  ;;  %989 = vmatprep.subr.bf16.mxu1 %v1086_v4  ;;  %v1095_v15 = vld [vmem:[#allocation5 + $0x8] sm:$0xff]   ;;  %v1097_v17 = vld [vmem:[#allocation5] sm:$0xff]   ;;  %v1108_v22 = vld [vmem:[%s1409_s30 + $0x10] ss:$8 sps:$4 sm:$0xff]   ;;  %s1182_s18 = scalar_lea.vmem %s1181_s8, 2048  ;;  %p1183_p13 = scmp.lt.s32.totalorder %s1472_s21, %s1181_s8 }
  0x47   : > { %538 = vmatprep.mubr.bf16.mxu1 %v1103_v12  ;;  %v1109_v23 = vld [vmem:[%s1409_s30 + $0x50] ss:$8 sps:$4 sm:$0xff]   ;;  %v1110_v24 = vld [vmem:[%s1409_s30 + $0x24] ss:$8 sps:$4 sm:$0xff]   ;;  %v1114_v26 = vld [vmem:[%s1409_s30 + $0x20] ss:$8 sps:$4 sm:$0xff]   ;;  %p1179_p12 = pneg %p1178_p8  ;;  %p1184_p0 = scmp.lt.s32.totalorder %s1182_s18, %s1176_s10 }
  0x48   : > { %v1112_v25 = vld [vmem:[%s1409_s30 + $0x64] ss:$8 sps:$4 sm:$0xff]   ;;  %v1115_v27 = vld [vmem:[%s1409_s30 + $0x60] ss:$8 sps:$4 sm:$0xff]   ;;  %v1116_v28 = vld [vmem:[%s1409_s30 + $0x34] ss:$8 sps:$4 sm:$0xff]  }
  0x49   : > { %928 = vmatpush3.bf16.msra.mxu0 %v1087_v5  ;;  %997 = vmatpush3.bf16.msra.mxu1 %v1087_v5  ;;  %v1118_v29 = vld [vmem:[%s1409_s30 + $0x74] ss:$8 sps:$4 sm:$0xff]   ;;  %v1120_v30 = vld [vmem:[%s1409_s30 + $0x30] ss:$8 sps:$4 sm:$0xff]   ;;  %v1438_v36 = vld [vmem:[%s1523_s2] ss:$0 sm:$0xff]  ;;  %p1185_p2 = por %p1184_p0, %p1183_p13 }
  0x4a   : > { %929 = vmatprep.subr.bf16.mxu0 %v1088_v6  ;;  %990 = vmatprep.subr.bf16.mxu1 %v1088_v6  ;;  %v1121_v31 = vld [vmem:[%s1409_s30 + $0x70] ss:$8 sps:$4 sm:$0xff]  }
  0x4b   : > { %p1186_p3 = pnand %p1185_p2, %p1179_p12 }
  0x4d   : > { %930 = vmatpush3.bf16.msra.mxu0 %v1089_v7  ;;  %998 = vmatpush3.bf16.msra.mxu1 %v1089_v7 }
  0x4e   : > { %931 = vmatprep.subr.bf16.mxu0 %v1090_v8  ;;  %991 = vmatprep.subr.bf16.mxu1 %v1090_v8 }
  0x51   : > { %932 = vmatpush3.bf16.msra.mxu0 %v1091_v9  ;;  %999 = vmatpush3.bf16.msra.mxu1 %v1091_v9 }
  0x52   : > { %933 = vmatprep.subr.bf16.mxu0 %v1092_v10  ;;  %992 = vmatprep.subr.bf16.mxu1 %v1092_v10 }
  0x55   : > { %934 = vmatpush3.bf16.msra.mxu0 %v1093_v13  ;;  %1000 = vmatpush3.bf16.msra.mxu1 %v1093_v13 }
  0x56   : > { %935 = vmatprep.subr.bf16.mxu0 %v1094_v14  ;;  %993 = vmatprep.subr.bf16.mxu1 %v1094_v14 }
  0x59   : > { %936 = vmatpush3.bf16.msra.mxu0 %v1095_v15  ;;  %1001 = vmatpush3.bf16.msra.mxu1 %v1095_v15 }
  0x5a   : > { %937 = vmatprep.subr.bf16.mxu0 %v1096_v16  ;;  %994 = vmatprep.subr.bf16.mxu1 %v1096_v16 }
  0x5d   : > { %938 = vmatpush3.bf16.msra.mxu0 %v1097_v17  ;;  %1002 = vmatpush3.bf16.msra.mxu1 %v1097_v17 }
  0x60   : > { %507 = vmatmul.mubr.bf16.vlgmr.msra.gmra.mxu0 %v1098_v18  ;;  %539 = vmatmul.mubr.bf16.vlgmr.msra.gmra.mxu1 %v1101_v19 }
  0x61   : > { %514 = vmatprep.mubr.bf16.mxu0 %v1104_v20  ;;  %546 = vmatprep.mubr.bf16.mxu1 %v1106_v21 }
  0x68   : > { %515 = vmatmul.mubr.bf16.gmra.mxu0 %v1108_v22  ;;  %547 = vmatmul.mubr.bf16.gmra.mxu1 %v1109_v23 }
  0x69   : > { %522 = vmatprep.mubr.bf16.mxu0 %v1110_v24  ;;  %554 = vmatprep.mubr.bf16.mxu1 %v1112_v25 }
  0x70   : > { %523 = vmatmul.mubr.bf16.gmra.mxu0 %v1114_v26  ;;  %555 = vmatmul.mubr.bf16.gmra.mxu1 %v1115_v27 }
  0x71   : > { %530 = vmatprep.mubr.bf16.mxu0 %v1116_v28  ;;  %562 = vmatprep.mubr.bf16.mxu1 %v1118_v29 }
  0x78   : > { %531 = vmatmul.mubr.bf16.gmra.mxu0 %v1120_v30  ;;  %563 = vmatmul.mubr.bf16.gmra.mxu1 %v1121_v31 }
 0x120   : > { %v939_v32 = vpop.f32.mrf.mxu0  ;;  %v963_v33 = vpop.f32.mrf.mxu1 }
 0x122   : > { %v940_v34 = vpop.f32.mrf.mxu0  ;;  %v964_v35 = vpop.f32.mrf.mxu1 }
 0x123   : > { %v941_v37 = vadd.f32 %v940_v34, %v939_v32  ;;  %v965_v38 = vadd.f32 %v964_v35, %v963_v33 }
 0x124   : > { %v942_v39 = vpop.f32.mrf.mxu0  ;;  %v966_v40 = vpop.f32.mrf.mxu1 }
 0x125   : > { %v509_v41 = vadd.f32 %v941_v37, %v1438_v36  ;;  %v541_v42 = vadd.f32 %v965_v38, %v1438_v36 }
 0x126   : > { %v943_v43 = vpop.f32.mrf.mxu0  ;;  %v967_v44 = vpop.f32.mrf.mxu1 }
 0x127   : > { %v944_v45 = vadd.f32 %v943_v43, %v942_v39  ;;  %v968_v46 = vadd.f32 %v967_v44, %v966_v40  ;;  %v571_v51 = vmax.f32 %v509_v41, 0.0  ;;  %v579_v52 = vmax.f32 %v541_v42, 0.0 }
 0x128   : > { %v945_v47 = vpop.f32.mrf.mxu0  ;;  %v969_v48 = vpop.f32.mrf.mxu1 }
 0x129   : > { %v512_v49 = vadd.f32 %v944_v45, %v1438_v36  ;;  %v544_v50 = vadd.f32 %v968_v46, %v1438_v36 }
 0x12a   : > { %v946_v53 = vpop.f32.mrf.mxu0  ;;  %v970_v54 = vpop.f32.mrf.mxu1 }
 0x12b   : > { %v572_v55 = vmax.f32 %v512_v49, 0.0  ;;  %v580_v56 = vmax.f32 %v544_v50, 0.0  ;;  %v947_v57 = vadd.f32 %v946_v53, %v945_v47  ;;  %v971_v58 = vadd.f32 %v970_v54, %v969_v48 }
 0x12c   : > { %v948_v59 = vpop.f32.mrf.mxu0  ;;  %v972_v60 = vpop.f32.mrf.mxu1 }
 0x12d   : > { %v879_v61 = vpack.c.bf16 %v572_v55, %v571_v51  ;;  %v899_v62 = vpack.c.bf16 %v580_v56, %v579_v52  ;;  %v517_v63 = vadd.f32 %v947_v57, %v1438_v36  ;;  %v549_v0 = vadd.f32 %v971_v58, %v1438_v36 }
 0x12e   : > { %v949_v1 = vpop.f32.mrf.mxu0  ;;  %v973_v2 = vpop.f32.mrf.mxu1 }
 0x12f   : > { %880 = vst [vmem:[%s1447_s29] sm:$0xff] %v879_v61   ;;  %919 = vst [vmem:[%s1447_s29 + $0x20] sm:$0xff] %v899_v62   ;;  %v950_v3 = vadd.f32 %v949_v1, %v948_v59  ;;  %v974_v4 = vadd.f32 %v973_v2, %v972_v60  ;;  %v573_v9 = vmax.f32 %v517_v63, 0.0  ;;  %v581_v10 = vmax.f32 %v549_v0, 0.0 }
 0x130   : > { %v951_v5 = vpop.f32.mrf.mxu0  ;;  %v975_v6 = vpop.f32.mrf.mxu1 }
 0x131   : > { %v520_v7 = vadd.f32 %v950_v3, %v1438_v36  ;;  %v552_v8 = vadd.f32 %v974_v4, %v1438_v36 }
 0x132   : > { %v952_v11 = vpop.f32.mrf.mxu0  ;;  %v976_v12 = vpop.f32.mrf.mxu1 }
 0x133   : > { %v574_v13 = vmax.f32 %v520_v7, 0.0  ;;  %v582_v14 = vmax.f32 %v552_v8, 0.0  ;;  %v953_v15 = vadd.f32 %v952_v11, %v951_v5  ;;  %v977_v16 = vadd.f32 %v976_v12, %v975_v6 }
 0x134   : > { %v954_v17 = vpop.f32.mrf.mxu0  ;;  %v978_v18 = vpop.f32.mrf.mxu1 }
 0x135   : > { %v884_v19 = vpack.c.bf16 %v574_v13, %v573_v9  ;;  %v904_v20 = vpack.c.bf16 %v582_v14, %v581_v10  ;;  %v525_v21 = vadd.f32 %v953_v15, %v1438_v36  ;;  %v557_v22 = vadd.f32 %v977_v16, %v1438_v36 }
 0x136   : > { %v955_v23 = vpop.f32.mrf.mxu0  ;;  %v979_v24 = vpop.f32.mrf.mxu1 }
 0x137   : > { %916 = vst [vmem:[%s1447_s29 + $0x8] sm:$0xff] %v884_v19   ;;  %920 = vst [vmem:[%s1447_s29 + $0x28] sm:$0xff] %v904_v20   ;;  %v956_v25 = vadd.f32 %v955_v23, %v954_v17  ;;  %v980_v26 = vadd.f32 %v979_v24, %v978_v18  ;;  %v575_v31 = vmax.f32 %v525_v21, 0.0  ;;  %v583_v32 = vmax.f32 %v557_v22, 0.0 }
 0x138   : > { %v957_v27 = vpop.f32.mrf.mxu0  ;;  %v981_v28 = vpop.f32.mrf.mxu1 }
 0x139   : > { %v528_v29 = vadd.f32 %v956_v25, %v1438_v36  ;;  %v560_v30 = vadd.f32 %v980_v26, %v1438_v36 }
 0x13a   : > { %v958_v33 = vpop.f32.mrf.mxu0  ;;  %v982_v34 = vpop.f32.mrf.mxu1 }
 0x13b   : > { %v576_v35 = vmax.f32 %v528_v29, 0.0  ;;  %v584_v37 = vmax.f32 %v560_v30, 0.0  ;;  %v959_v38 = vadd.f32 %v958_v33, %v957_v27  ;;  %v983_v39 = vadd.f32 %v982_v34, %v981_v28 }
 0x13c   : > { %v960_v40 = vpop.f32.mrf.mxu0  ;;  %v984_v41 = vpop.f32.mrf.mxu1 }
 0x13d   : > { %v889_v42 = vpack.c.bf16 %v576_v35, %v575_v31  ;;  %v909_v43 = vpack.c.bf16 %v584_v37, %v583_v32  ;;  %v533_v46 = vadd.f32 %v959_v38, %v1438_v36  ;;  %v565_v47 = vadd.f32 %v983_v39, %v1438_v36 }
 0x13e   : > { %v961_v44 = vpop.f32.mrf.mxu0  ;;  %v985_v45 = vpop.f32.mrf.mxu1 }
 0x13f   : > { %917 = vst [vmem:[%s1447_s29 + $0x10] sm:$0xff] %v889_v42   ;;  %921 = vst [vmem:[%s1447_s29 + $0x30] sm:$0xff] %v909_v43   ;;  %v962_v48 = vadd.f32 %v961_v44, %v960_v40  ;;  %v986_v49 = vadd.f32 %v985_v45, %v984_v41  ;;  %v577_v52 = vmax.f32 %v533_v46, 0.0  ;;  %v585_v53 = vmax.f32 %v565_v47, 0.0 }
 0x141   : > { %v536_v50 = vadd.f32 %v962_v48, %v1438_v36  ;;  %v568_v51 = vadd.f32 %v986_v49, %v1438_v36 }
 0x143   : > { %v578_v54 = vmax.f32 %v536_v50, 0.0  ;;  %v586_v55 = vmax.f32 %v568_v51, 0.0 }
 0x145   : > { %v894_v56 = vpack.c.bf16 %v578_v54, %v577_v52  ;;  %v914_v57 = vpack.c.bf16 %v586_v55, %v585_v53 }
 0x147   : > { %918 = vst [vmem:[%s1447_s29 + $0x18] sm:$0xff] %v894_v56   ;;  %922 = vst [vmem:[%s1447_s29 + $0x38] sm:$0xff] %v914_v57  }
 0x148   : > { %1189 = shalt.err (!%p1186_p3)
}
 0x149   : > { %s1190_s26 = scalar_lea.hbm %s1470_s7, 1024  ;;  %s1194_s20 = scalar_lea.hbm %s1524_s3, 4096 }
 0x14a   : > { %p1191_p5 = scmp.ne.s32.totalorder %s1470_s7, %s1190_s26  ;;  %p1195_p6 = scmp.lt.s32.totalorder %s1470_s7, %s1524_s3 }
 0x14b   : > { %p1196_p11 = scmp.lt.s32.totalorder %s1194_s20, %s1190_s26 }
 0x14c   : > { %p1192_p7 = pnand %p1191_p5, %p1535_p4 }
 0x14d   : > { %p1197_p10 = por %p1196_p11, %p1195_p6 }
 0x14e   : > { %p1193_p9 = pneg %p1192_p7 }
 0x150   : > { %p1198_p1 = pnand %p1197_p10, %p1193_p9 }
 0x152   : > { %1201 = shalt.err (!%p1198_p1)
}
 0x153   : > { %s1269_s29 = smov 64   ;;  %s1270_s4 = smov 4  }
 0x154   : > { %1009 = dma.vmem_to_hbm [thread:$0]  (%p1535_p4), %s1472_s21, 1024, %s1470_s7, %s668_s15, %s1269_s29, %s1269_s29, %s1270_s4  }
 0x155 PF: > { %p1026_p8 = scmp.ge.s32.totalorder %s1260_s17, 2  ;;  %s697_s5 = sand.u32 1, %s1240_s12  }
 0x156   : > { %p1536_p12 = scmp.ne.s32.totalorder %s1529_s23, 0  ;;  %s698_s6 = scalar_lea.sflag [#allocation4], %s697_s5 }
 0x158   : > { %p1020_p13 = pnand %p1026_p8, %p1536_p12 }
 0x15a   : > { %p1021_p0 = pneg %p1020_p13 }
 0x15c   : > { %1235 = dma.done.wait (%p1021_p0), %s698_s6, 1024  }
 0x15d   : > { %1237 = vsyncadd (%p1021_p0), %s698_s6, 4294966272  ;;  %s20_s17 = sadd.s32 1, %s1260_s17   ;;  %s1537_s12 = smov %s1244_s13 }
 0x15e   : > { %p17_p2 = scmp.ge.s32.totalorder %s20_s17, 6   ;;  %s1538_s13 = smov %s1248_s14 }
 0x15f   : > { %s1539_s14 = smov %s1386_s19  ;;  %s1540_s15 = smov %s1256_s16 }
 0x160   : > { %s1541_s16 = smov %s1543_s28  ;;  %19 = sbr.rel (!%p17_p2) target bundleno = 7 (0x7), region = 85 }
 0x165   :  { %703 = vsyncpa [#allocation3], 1 }
 0x166   :  { %705 = vsyncpa [#allocation3 + $0x1], 1 }
 0x167   :  { %706 = vsyncpa [#allocation6], 1 }
 0x168   :  { %707 = vsyncpa [#allocation4], 1 }
 0x169   :  { %709 = vsyncpa [#allocation4 + $0x1], 1 }

</bundles_post_ra>
